<compile_context>
chip_gen: v6e
topology: v6e:2x2x1
jax: 0.10.0
libtpu: 0.0.40
codegen_flags: <defaults>
</compile_context>

<pallas_src>
import jax
import jax.numpy as jnp
from jax.experimental import pallas as pl
from jax.experimental.pallas import tpu as pltpu


def ann_kernel(x_ref, w1_ref, b1_ref, w2_ref, b2_ref, w3_ref, b3_ref, o_ref):
    # x_ref: (F, TB) bf16.  w*: (out, in) f32.  b*: (out, 1) f32.  o_ref: (C, TB) f32.
    x = x_ref[...].astype(jnp.float32)                                   # (F, TB)

    # fc1 + ReLU
    h1 = jnp.dot(w1_ref[...], x, preferred_element_type=jnp.float32) + b1_ref[...]
    h1 = jnp.maximum(h1, 0.0)                                            # (H1, TB)

    # fc2 + ReLU
    h2 = jnp.dot(w2_ref[...], h1, preferred_element_type=jnp.float32) + b2_ref[...]
    h2 = jnp.maximum(h2, 0.0)                                            # (H2, TB)

    # out layer
    logits = jnp.dot(w3_ref[...], h2, preferred_element_type=jnp.float32) + b3_ref[...]  # (C, TB)

    n_classes = logits.shape[0]
    if n_classes == 2:
        # Specialized 2-class softmax: softmax([l0, l1])[0] = sigmoid(l0 - l1).
        # Stable form using exp(-|d|) in (0, 1]; reciprocal goes to the EUP slot.
        d = logits[0:1, :] - logits[1:2, :]                              # (1, TB)
        e = jnp.exp(-jnp.abs(d))
        p_hi = pl.reciprocal(1.0 + e, approx=True)                       # prob of larger logit
        p0 = jnp.where(d >= 0.0, p_hi, 1.0 - p_hi)
        p1 = 1.0 - p0
        o_ref[...] = jnp.concatenate([p0, p1], axis=0).astype(o_ref.dtype)
    else:
        # Generic max-stabilized softmax over the class (sublane) axis.
        m = jnp.max(logits, axis=0, keepdims=True)
        e = jnp.exp(logits - m)
        denom = jnp.sum(e, axis=0, keepdims=True)
        o_ref[...] = (e * pl.reciprocal(denom, approx=True)).astype(o_ref.dtype)


def ann_forward(x, params, *, tb=2048):
    """x: (B, F) float32.  params: PyTorch-layout weights/biases.  Returns (B, C) float32."""
    w1, b1, w2, b2, w3, b3 = params
    B, F = x.shape
    H1 = w1.shape[0]
    H2 = w2.shape[0]
    C = w3.shape[0]

    # Transpose so batch is the lane axis; stream activations as bf16.
    x_t = jnp.transpose(x).astype(jnp.bfloat16)                          # (F, B)

    # Batch tile: multiple of 128 lanes, capped at `tb`; pad B up to a tile multiple.
    b128 = ((B + 127) // 128) * 128
    TB = min(tb, b128)
    B_pad = ((B + TB - 1) // TB) * TB
    if B_pad != B:
        x_t = jnp.pad(x_t, ((0, 0), (0, B_pad - B)))

    grid = (B_pad // TB,)

    cost = pl.CostEstimate(
        flops=2 * B_pad * (F * H1 + H1 * H2 + H2 * C),
        transcendentals=B_pad,
        bytes_accessed=int(F * B_pad * 2 + C * B_pad * 4
                           + sum(int(p.size) * 4 for p in params)),
    )

    out_t = pl.pallas_call(
        ann_kernel,
        out_shape=jax.ShapeDtypeStruct((C, B_pad), jnp.float32),
        grid_spec=pltpu.PrefetchScalarGridSpec(
            num_scalar_prefetch=0,
            grid=grid,
            in_specs=[
                pl.BlockSpec((F, TB), lambda i: (0, i)),     # x tile: streamed over batch
                pl.BlockSpec((H1, F), lambda i: (0, 0)),     # weights/biases: resident
                pl.BlockSpec((H1, 1), lambda i: (0, 0)),
                pl.BlockSpec((H2, H1), lambda i: (0, 0)),
                pl.BlockSpec((H2, 1), lambda i: (0, 0)),
                pl.BlockSpec((C, H2), lambda i: (0, 0)),
                pl.BlockSpec((C, 1), lambda i: (0, 0)),
            ],
            out_specs=pl.BlockSpec((C, TB), lambda i: (0, i)),
        ),
        compiler_params=pltpu.CompilerParams(
            dimension_semantics=("parallel",),               # v7x: shard batch across 2 TCs
            vmem_limit_bytes=32 * 1024 * 1024,
        ),
        cost_estimate=cost,
    )(x_t, w1, b1, w2, b2, w3, b3)

    # Back to (B, C), dropping batch padding.
    return jnp.transpose(out_t[:, :B])


def init_params(key, input_features=4, hidden1=8, hidden2=16, out_features=2):
    """Deterministic init mimicking nn.Linear default (uniform +/- 1/sqrt(fan_in)).

    Weights are stored in PyTorch layout (out_features, in_features); biases as
    (out_features, 1) so torch state_dicts can be loaded without transposing."""
    ks = jax.random.split(key, 6)

    def linear(kw, kb, fan_in, fan_out):
        bound = 1.0 / jnp.sqrt(fan_in)
        w = jax.random.uniform(kw, (fan_out, fan_in), jnp.float32, -bound, bound)
        b = jax.random.uniform(kb, (fan_out, 1), jnp.float32, -bound, bound)
        return w, b

    w1, b1 = linear(ks[0], ks[1], input_features, hidden1)
    w2, b2 = linear(ks[2], ks[3], hidden1, hidden2)
    w3, b3 = linear(ks[4], ks[5], hidden2, out_features)
    return (w1, b1, w2, b2, w3, b3)


if __name__ == "__main__":
    key = jax.random.PRNGKey(0)
    k_x, k_p = jax.random.split(key)

    B, F = 8, 4
    x = jax.random.normal(k_x, (B, F), jnp.float32)
    params = init_params(k_p, input_features=F, hidden1=8, hidden2=16, out_features=2)

    out = jax.block_until_ready(ann_forward(x, params))

    # Pure-JAX reference (with the same bf16 rounding of x that the kernel streams).
    w1, b1, w2, b2, w3, b3 = params
    xr = x.astype(jnp.bfloat16).astype(jnp.float32)
    h1 = jnp.maximum(xr @ w1.T + b1[:, 0], 0.0)
    h2 = jnp.maximum(h1 @ w2.T + b2[:, 0], 0.0)
    ref = jax.nn.softmax(h2 @ w3.T + b3[:, 0], axis=-1)

    assert out.shape == (B, 2)
    assert jnp.allclose(jnp.sum(out, axis=-1), 1.0, atol=1e-5)
    assert jnp.allclose(out, ref, atol=2e-3, rtol=2e-3)

    print("KERNEL_OK")
</pallas_src>

<mosaic_0001>
module attributes {stable_mosaic.version = 11 : i64} {
  func.func @ann_kernel(%arg0: i32, %arg1: memref<4x128xbf16, #tpu.memory_space<vmem>>, %arg2: memref<8x4xf32, #tpu.memory_space<vmem>>, %arg3: memref<8x1xf32, #tpu.memory_space<vmem>>, %arg4: memref<16x8xf32, #tpu.memory_space<vmem>>, %arg5: memref<16x1xf32, #tpu.memory_space<vmem>>, %arg6: memref<2x16xf32, #tpu.memory_space<vmem>>, %arg7: memref<2x1xf32, #tpu.memory_space<vmem>>, %arg8: memref<2x128xf32, #tpu.memory_space<vmem>>) attributes {dimension_semantics = [#tpu.dimension_semantics<parallel>], iteration_bounds = array<i64: 1>, scalar_prefetch = 0 : i64, scratch_operands = 0 : i64, tpu.core_type = #tpu.core_type<tc>, window_params = [{transform_indices = @transform_0, window_bounds = array<i64: 4, 128>}, {pipeline_mode = #tpu.pipeline_mode<synchronous>, transform_indices = @transform_1, window_bounds = array<i64: 8, 4>}, {pipeline_mode = #tpu.pipeline_mode<synchronous>, transform_indices = @transform_2, window_bounds = array<i64: 8, 1>}, {pipeline_mode = #tpu.pipeline_mode<synchronous>, transform_indices = @transform_3, window_bounds = array<i64: 16, 8>}, {pipeline_mode = #tpu.pipeline_mode<synchronous>, transform_indices = @transform_4, window_bounds = array<i64: 16, 1>}, {pipeline_mode = #tpu.pipeline_mode<synchronous>, transform_indices = @transform_5, window_bounds = array<i64: 2, 16>}, {pipeline_mode = #tpu.pipeline_mode<synchronous>, transform_indices = @transform_6, window_bounds = array<i64: 2, 1>}, {transform_indices = @transform_7, window_bounds = array<i64: 2, 128>}]} {
    %c0 = arith.constant 0 : index
    %c0_0 = arith.constant 0 : index
    %0 = vector.load %arg1[%c0, %c0_0] : memref<4x128xbf16, #tpu.memory_space<vmem>>, vector<4x128xbf16>
    %1 = arith.extf %0 : vector<4x128xbf16> to vector<4x128xf32>
    %c0_1 = arith.constant 0 : index
    %c0_2 = arith.constant 0 : index
    %2 = vector.load %arg2[%c0_1, %c0_2] : memref<8x4xf32, #tpu.memory_space<vmem>>, vector<8x4xf32>
    %cst = arith.constant dense<0.000000e+00> : vector<8x128xf32>
    %3 = tpu.matmul %2, %1, %cst {dimension_numbers = #tpu.dot_dimension_numbers<[1], [0], [0], [1], [0, 0, 1, 1], [], []>} : vector<8x4xf32>, vector<4x128xf32>, vector<8x128xf32> -> vector<8x128xf32>
    %c0_3 = arith.constant 0 : index
    %c0_4 = arith.constant 0 : index
    %4 = vector.load %arg3[%c0_3, %c0_4] : memref<8x1xf32, #tpu.memory_space<vmem>>, vector<8x1xf32>
    %5 = vector.broadcast %4 : vector<8x1xf32> to vector<8x128xf32>
    %6 = arith.addf %3, %5 : vector<8x128xf32>
    %cst_5 = arith.constant 0.000000e+00 : f32
    %7 = vector.broadcast %cst_5 : f32 to vector<8x128xf32>
    %8 = arith.maximumf %6, %7 : vector<8x128xf32>
    %c0_6 = arith.constant 0 : index
    %c0_7 = arith.constant 0 : index
    %9 = vector.load %arg4[%c0_6, %c0_7] : memref<16x8xf32, #tpu.memory_space<vmem>>, vector<16x8xf32>
    %cst_8 = arith.constant dense<0.000000e+00> : vector<16x128xf32>
    %10 = tpu.matmul %9, %8, %cst_8 {dimension_numbers = #tpu.dot_dimension_numbers<[1], [0], [0], [1], [0, 0, 1, 1], [], []>} : vector<16x8xf32>, vector<8x128xf32>, vector<16x128xf32> -> vector<16x128xf32>
    %c0_9 = arith.constant 0 : index
    %c0_10 = arith.constant 0 : index
    %11 = vector.load %arg5[%c0_9, %c0_10] : memref<16x1xf32, #tpu.memory_space<vmem>>, vector<16x1xf32>
    %12 = vector.broadcast %11 : vector<16x1xf32> to vector<16x128xf32>
    %13 = arith.addf %10, %12 : vector<16x128xf32>
    %cst_11 = arith.constant 0.000000e+00 : f32
    %14 = vector.broadcast %cst_11 : f32 to vector<16x128xf32>
    %15 = arith.maximumf %13, %14 : vector<16x128xf32>
    %c0_12 = arith.constant 0 : index
    %c0_13 = arith.constant 0 : index
    %16 = vector.load %arg6[%c0_12, %c0_13] : memref<2x16xf32, #tpu.memory_space<vmem>>, vector<2x16xf32>
    %cst_14 = arith.constant dense<0.000000e+00> : vector<2x128xf32>
    %17 = tpu.matmul %16, %15, %cst_14 {dimension_numbers = #tpu.dot_dimension_numbers<[1], [0], [0], [1], [0, 0, 1, 1], [], []>} : vector<2x16xf32>, vector<16x128xf32>, vector<2x128xf32> -> vector<2x128xf32>
    %c0_15 = arith.constant 0 : index
    %c0_16 = arith.constant 0 : index
    %18 = vector.load %arg7[%c0_15, %c0_16] : memref<2x1xf32, #tpu.memory_space<vmem>>, vector<2x1xf32>
    %19 = vector.broadcast %18 : vector<2x1xf32> to vector<2x128xf32>
    %20 = arith.addf %17, %19 : vector<2x128xf32>
    %21 = vector.extract_strided_slice %20 {offsets = [0, 0], sizes = [1, 128], strides = [1, 1]} : vector<2x128xf32> to vector<1x128xf32>
    %22 = vector.extract_strided_slice %20 {offsets = [1, 0], sizes = [1, 128], strides = [1, 1]} : vector<2x128xf32> to vector<1x128xf32>
    %23 = arith.subf %21, %22 : vector<1x128xf32>
    %24 = math.absf %23 : vector<1x128xf32>
    %cst_17 = arith.constant 0.000000e+00 : f32
    %25 = vector.broadcast %cst_17 : f32 to vector<1x128xf32>
    %26 = arith.subf %25, %24 : vector<1x128xf32>
    %27 = math.exp %26 : vector<1x128xf32>
    %cst_18 = arith.constant 1.000000e+00 : f32
    %28 = vector.broadcast %cst_18 : f32 to vector<1x128xf32>
    %29 = arith.addf %28, %27 : vector<1x128xf32>
    %30 = tpu.reciprocal %29 {approx = true} : vector<1x128xf32> -> vector<1x128xf32>
    %cst_19 = arith.constant 0.000000e+00 : f32
    %31 = vector.broadcast %cst_19 : f32 to vector<1x128xf32>
    %32 = arith.cmpf oge, %23, %31 : vector<1x128xf32>
    %cst_20 = arith.constant 1.000000e+00 : f32
    %33 = vector.broadcast %cst_20 : f32 to vector<1x128xf32>
    %34 = arith.subf %33, %30 : vector<1x128xf32>
    %35 = arith.select %32, %30, %34 : vector<1x128xi1>, vector<1x128xf32>
    %cst_21 = arith.constant 1.000000e+00 : f32
    %36 = vector.broadcast %cst_21 : f32 to vector<1x128xf32>
    %37 = arith.subf %36, %35 : vector<1x128xf32>
    %38 = tpu.concatenate %35, %37 in 0 : vector<1x128xf32>, vector<1x128xf32> -> vector<2x128xf32>
    %c0_22 = arith.constant 0 : index
    %c0_23 = arith.constant 0 : index
    %39 = vector.load %arg8[%c0_22, %c0_23] : memref<2x128xf32, #tpu.memory_space<vmem>>, vector<2x128xf32>
    tpu.vector_store %arg8[%c0_22, %c0_23], %38 {strides = array<i32>} : memref<2x128xf32, #tpu.memory_space<vmem>>, vector<2x128xf32>,
    return
  }
  func.func @transform_0(%arg0: i32) -> (i32, i32) {
    %c0_i32 = arith.constant 0 : i32
    %c0_i32_0 = arith.constant 0 : i32
    return %c0_i32, %arg0 : i32, i32
  }
  func.func @transform_1(%arg0: i32) -> (i32, i32) {
    %c0_i32 = arith.constant 0 : i32
    %c0_i32_0 = arith.constant 0 : i32
    %c0_i32_1 = arith.constant 0 : i32
    return %c0_i32, %c0_i32_0 : i32, i32
  }
  func.func @transform_2(%arg0: i32) -> (i32, i32) {
    %c0_i32 = arith.constant 0 : i32
    %c0_i32_0 = arith.constant 0 : i32
    %c0_i32_1 = arith.constant 0 : i32
    return %c0_i32, %c0_i32_0 : i32, i32
  }
  func.func @transform_3(%arg0: i32) -> (i32, i32) {
    %c0_i32 = arith.constant 0 : i32
    %c0_i32_0 = arith.constant 0 : i32
    %c0_i32_1 = arith.constant 0 : i32
    return %c0_i32, %c0_i32_0 : i32, i32
  }
  func.func @transform_4(%arg0: i32) -> (i32, i32) {
    %c0_i32 = arith.constant 0 : i32
    %c0_i32_0 = arith.constant 0 : i32
    %c0_i32_1 = arith.constant 0 : i32
    return %c0_i32, %c0_i32_0 : i32, i32
  }
  func.func @transform_5(%arg0: i32) -> (i32, i32) {
    %c0_i32 = arith.constant 0 : i32
    %c0_i32_0 = arith.constant 0 : i32
    %c0_i32_1 = arith.constant 0 : i32
    return %c0_i32, %c0_i32_0 : i32, i32
  }
  func.func @transform_6(%arg0: i32) -> (i32, i32) {
    %c0_i32 = arith.constant 0 : i32
    %c0_i32_0 = arith.constant 0 : i32
    %c0_i32_1 = arith.constant 0 : i32
    return %c0_i32, %c0_i32_0 : i32, i32
  }
  func.func @transform_7(%arg0: i32) -> (i32, i32) {
    %c0_i32 = arith.constant 0 : i32
    %c0_i32_0 = arith.constant 0 : i32
    return %c0_i32, %arg0 : i32, i32
  }
}

</mosaic_0001>

<bundles_post_ra>
// kernel: tpu_custom_call.1
= control target key start
LH: loop header
LB: loop body
LE: loop exit
PB: predicated region body
PF: predicated region fallthrough
CT: control target
= control target key end

     0   :  { %vm40_vm0 = vcmask 1043456   ;;  %v390_v1 = vmov 0.0   ;;  %vm391_vm1 = vmmov 0   ;;  %vm36_vm2 = vcmask 31744   ;;  %s464_s0 = inlined_call_operand.vmem [shape: bf16[4,128], index: 0, kind: input, shape index: {}]   ;;  %s465_s1 = inlined_call_operand.vmem [shape: f32[8,4], index: 1, kind: input, shape index: {}]   ;;  %s466_s2 = inlined_call_operand.vmem [shape: f32[8,1], index: 2, kind: input, shape index: {}]   ;;  %s467_s3 = inlined_call_operand.vmem [shape: f32[16,8], index: 3, kind: input, shape index: {}]   ;;  %s468_s4 = inlined_call_operand.vmem [shape: f32[16,1], index: 4, kind: input, shape index: {}]   ;;  %s469_s5 = inlined_call_operand.vmem [shape: f32[2,16], index: 5, kind: input, shape index: {}]   ;;  %s470_s6 = inlined_call_operand.vmem [shape: f32[2,1], index: 6, kind: input, shape index: {}]   ;;  %s471_s7 = inlined_call_operand.hbm [shape: f32[2,128], index: 7, kind: output, shape index: {}]  }
   0x1   :  { %v27_v0 = vld [vmem:[%s464_s0] sm:$0x3]  ;;  %341 = vmatprep.subr.mxu0 %v390_v1  ;;  %343 = vmatprep.mubr.msk.f32.mxu0 %vm391_vm1, %v390_v1 }
   0x2   :  { %v28_v2 = vunpack.c.l.bf16 %v27_v0  ;;  %v29_v3 = vld [vmem:[%s465_s1] sm:$0xff] }
   0x3   :  { %v30_v4 = vld [vmem:[%s466_s2] sm:$0xff] }
   0x4   :  { %12 = vsyncpa [#allocation3], 0  ;;  %v392_v5 = vmov 0   ;;  %342 = vmatpush3.msk.msra.mxu0 %vm40_vm0, %v28_v2  ;;  %v118_v6 = vld [vmem:[%s468_s4 + $0x8] sm:$0xff]  ;;  %v115_v7 = vld [vmem:[%s467_s3] sm:$0xff]  ;;  %vm129_vm3 = vcmask 64512  }
   0x5   :  { %362 = vset.pattern.permute.xlu0 %v392_v5  ;;  %363 = vset.pattern.permute.xlu1 %v392_v5  ;;  %v117_v8 = vld [vmem:[%s468_s4] sm:$0xff]  ;;  %v116_v15 = vld [vmem:[%s467_s3 + $0x8] sm:$0xff]  ;;  %vm220_vm4 = vcmask 130048   ;;  %s393_s3 = smov [#allocation2]   ;;  %vm311_vm6 = vcmask 1040384  }
   0x6   :  { %33 = vperm.xlu0 %362, %v30_v4   ;;  %344 = vmatmul.mubr.msk.f32.vlgmr.msra.gmra.mxu0 %vm36_vm2, %v29_v3  ;;  %v214_v9 = vld [vmem:[%s470_s6] sm:$0x3] }
   0x7   :  { %351 = vmatprep.subr.mxu0 %v390_v1  ;;  %355 = vmatprep.mubr.msk.f32.mxu0 %vm391_vm1, %v390_v1  ;;  %v213_v24 = vld [vmem:[%s469_s5] sm:$0x3]  ;;  %s320_s5 = sshll.u32 %s393_s3, 4  ;;  %s321_s5 = int_to_ptr.vmem [resolvable:$true] %s320_s5 }
   0x8   :  { %348 = vmatprep.mubr.msk.f32.mxu1 %vm129_vm3, %v115_v7  ;;  %121 = vperm.xlu1 %363, %v117_v8   ;;  %s368_s14 = scalar_lea.vmem %s321_s5, 32  ;;  %p373_p1 = scmp.lt.s32.totalorder %s321_s5, %s321_s5 }
   0x9   :  { %p369_p0 = scmp.ne.s32.totalorder %s321_s5, %s368_s14  ;;  %p374_p2 = scmp.lt.s32.totalorder %s368_s14, %s368_s14 }
   0xa   :  { %126 = vperm.xlu0 %362, %v118_v6  }
   0xb   :  { %p375_p3 = por %p374_p2, %p373_p1 }
   0xc   :  { %217 = vperm.xlu1 %363, %v214_v9  }
   0xd   :  { %p376_p4 = pnand %p375_p3, %p369_p0 }
  0x81   :  { %v34_v10 = vpop.permute.xlu0 %33 }
  0x83   :  { %v122_v19 = vpop.permute.xlu1 %121 }
  0x85   :  { %v127_v16 = vpop.permute.xlu0 %126 }
  0x87   :  { %v218_v25 = vpop.permute.xlu1 %217 }
  0xc6   :  { %v110_v11 = vpop.f32.mrf.mxu0 }
  0xc7   :  { %v111_v12 = vadd.f32 %v110_v11, %v34_v10 }
  0xc8   :  { %v345_v13 = vpop.f32.mrf.mxu0 }
  0xc9   :  { %v114_v14 = vmax.f32 %v111_v12, 0.0 }
  0xcb   :  { %346 = vmatprep.subr.mxu1 %v114_v14 }
  0xcc   :  { %347 = vmatpush3.msra.mxu1 %v114_v14 }
  0xcd   :  { %349 = vmatmul.mubr.msk.f32.vlgmr.msra.gmra.mxu1 %vm129_vm3, %v116_v15 }
 0x18d   :  { %v350_v17 = vpop.f32.mrf.mxu1 }
 0x18e   :  { %v208_v18 = vadd.f32 %v350_v17, %v127_v16 }
 0x18f   :  { %v202_v20 = vpop.f32.mrf.mxu1 }
 0x190   :  { %v212_v21 = vmax.f32 %v208_v18, 0.0  ;;  %v203_v22 = vadd.f32 %v202_v20, %v122_v19 }
 0x192   :  { %v211_v23 = vmax.f32 %v203_v22, 0.0  ;;  %352 = vmatpush3.msra.mxu0 %v212_v21 }
 0x193   :  { %353 = vmatprep.subr.mxu0 %v390_v1 }
 0x194   :  { %354 = vmatpush3.msra.mxu0 %v211_v23 }
 0x195   :  { %356 = vmatmul.mubr.msk.f32.vlgmr.msra.gmra.mxu0 %vm220_vm4, %v213_v24 }
 0x255   :  { %v290_v26 = vpop.f32.mrf.mxu0 }
 0x256   :  { %v291_v27 = vadd.f32 %v290_v26, %v218_v25 }
 0x257   :  { %v357_v28 = vpop.f32.mrf.mxu0 }
 0x258   :  { %v295_v29 = vrot.slane %v291_v27, 1 }
 0x25a   :  { %v297_v30 = vsub.f32 %v291_v27, %v295_v29 }
 0x25c   :  { %v298_v31 = vand.u32 2147483647, %v297_v30  ;;  %vm304_vm5 = vcmp.ge.f32.partialorder %v297_v30, 0.0 }
 0x25e   :  { %v299_v32 = vsub.f32 0.0, %v298_v31 }
 0x260   :  { %v300_v33 = vmul.f32 1.442695, %v299_v32 }
 0x262   :  { %364 = vpow2.f32 %v300_v33 }
 0x26f   :  { %v365_v34 = vpop.eup %364 }
 0x270   :  { %v302_v35 = vadd.f32 1.0, %v365_v34 }
 0x272   :  { %366 = vrcp.f32 %v302_v35 }
 0x27f   :  { %v367_v36 = vpop.eup %366 }
 0x280   :  { %v305_v37 = vsub.f32 1.0, %v367_v36 }
 0x282   :  { %v306_v38 = vsel %vm304_vm5, %v367_v36, %v305_v37 }
 0x283   :  { %v307_v39 = vsub.f32 1.0, %v306_v38 }
 0x285   :  { %v309_v40 = vrot.slane %v307_v39, 7 }
 0x287   :  { %v312_v41 = vsel %vm311_vm6, %v306_v38, %v309_v40 }
 0x288   :  { %313 = vst [vmem:[#allocation2] sm:$0x3] %v312_v41 }
 0x289   :  { %379 = shalt.err (!%p376_p4)
}
 0x28a   :  { %323 = dma.vmem_to_hbm [thread:$0]  %s321_s5, 32, %s471_s7, [#allocation3]  }
 0x28b   :  { %388 = dma.done.wait [#allocation3], 32  }
 0x28c   :  { %389 = vsyncadd [#allocation3], 4294967264 }
 0x28d   :  { %327 = vsyncpa [#allocation3], 1 }

</bundles_post_ra>
